<compile_context>
chip_gen: v6e
topology: v6e:2x2x1
jax: 0.10.0
libtpu: 0.0.40
codegen_flags: <defaults>
</compile_context>

<pallas_src>
import math
import functools

import jax
import jax.numpy as jnp
from jax.experimental import pallas as pl
from jax.experimental.pallas import tpu as pltpu


# ---------------------------------------------------------------------------
# Kernel 1: DistillKL  (temperature-scaled KL divergence between logits)
# Tiled over the batch axis with an elementwise (tb, C) accumulator.
# ---------------------------------------------------------------------------
def _kd_kernel(s_ref, t_ref, o_ref, acc_ref,
               *, inv_temp, scale, rows_total, tb, needs_mask):
    i = pl.program_id(0)

    @pl.when(i == 0)
    def _():
        acc_ref[...] = jnp.zeros_like(acc_ref)

    s = s_ref[...].astype(jnp.float32)
    t = t_ref[...].astype(jnp.float32)
    if needs_mask:
        # Zero the tail rows of the last (partial) tile: zeroed rows produce
        # log_p_t == log_p_s exactly, so they contribute exactly 0.
        rem = rows_total - i * tb
        row = jax.lax.broadcasted_iota(jnp.int32, (tb, 1), 0)
        rmask = row < rem
        s = jnp.where(rmask, s, 0.0)
        t = jnp.where(rmask, t, 0.0)
    s = s * inv_temp
    t = t * inv_temp

    # log_softmax over the class axis for the student
    s_sh = s - jnp.max(s, axis=-1, keepdims=True)
    log_p_s = s_sh - jnp.log(jnp.sum(jnp.exp(s_sh), axis=-1, keepdims=True))

    # softmax / log_softmax over the class axis for the teacher
    t_sh = t - jnp.max(t, axis=-1, keepdims=True)
    t_exp = jnp.exp(t_sh)
    t_sum = jnp.sum(t_exp, axis=-1, keepdims=True)
    p_t = t_exp * pl.reciprocal(t_sum, approx=True)   # EUP slot, frees VALU
    log_p_t = t_sh - jnp.log(t_sum)

    # F.kl_div(log_p_s, p_t, reduction='sum') = sum p_t * (log p_t - log p_s)
    # Elementwise accumulation only; the scalar reduce happens in the epilogue.
    acc_ref[...] += p_t * (log_p_t - log_p_s)

    @pl.when(i == pl.num_programs(0) - 1)
    def _():
        o_ref[...] = jnp.sum(acc_ref[...], keepdims=True) * scale   # * T^2 / B


def _pick_kd_tile(batch, num_classes, budget_bytes=16 * 1024 * 1024):
    """Largest batch tile s.t. 2 inputs x 2 pipeline buffers of (tb, C) f32
    stay within budget; multiple of 8 unless the whole batch fits."""
    per_row = 4 * 4 * num_classes          # 2 inputs * 2 buffers * 4 bytes
    tb = budget_bytes // max(per_row, 1)
    if tb >= batch:
        return batch                        # single block == full batch dim
    return max(8, (tb // 8) * 8)


def kd_loss(o_s, o_t, temperature):
    B, C = o_s.shape
    tb = _pick_kd_tile(B, C)
    grid = (pl.cdiv(B, tb),)
    needs_mask = (B % tb) != 0

    kern = functools.partial(_kd_kernel,
                             inv_temp=1.0 / float(temperature),
                             scale=float(temperature) ** 2 / B,
                             rows_total=B, tb=tb, needs_mask=needs_mask)
    cost = pl.CostEstimate(flops=int(12 * B * C),
                           transcendentals=int(2 * B * C + 3 * B),
                           bytes_accessed=int(4 * 2 * B * C + 4))

    out = pl.pallas_call(
        kern,
        out_shape=jax.ShapeDtypeStruct((1, 1), jnp.float32),
        grid=grid,
        in_specs=[
            pl.BlockSpec((tb, C), lambda i: (i, 0)),
            pl.BlockSpec((tb, C), lambda i: (i, 0)),
        ],
        out_specs=pl.BlockSpec((1, 1), lambda i: (0, 0)),
        scratch_shapes=[pltpu.VMEM((tb, C), jnp.float32)],
        compiler_params=pltpu.CompilerParams(
            dimension_semantics=("arbitrary",),
            vmem_limit_bytes=48 * 1024 * 1024),
        cost_estimate=cost,
    )(o_s, o_t)
    return out[0, 0]


# ---------------------------------------------------------------------------
# Kernel 2: fit_loss = MSE( ReLU(BN(Conv1x1(f_s))), f_t )
#   NCHW kept:  x: (N, Cin, HW)   t: (N, Cout, HW)   w: (Cout, Cin) [bf16]
#   gamma/beta: (Cout, 1)     BN training mode (biased batch stats), eps=1e-5
#
#   Grid = (phase, N, cdiv(HW, T)) with phase outermost:
#     phase 0 (Cin <= Cout, "Gram" path):
#         G   += x @ x^T          (Cin, Cin)   MXU, bf16 in / f32 acc
#         xsum += x               (Cin, T)     plain VPU add
#     phase 0 (Cin > Cout, direct path):
#         y = W @ x; ysum += y; ysq += y*y     (Cout, T) elementwise
#     phase 1 first tile: finalize BN scale/shift from the stats, zero SSE
#     phase 1: y = W@x, BN + ReLU, sse_acc += d*d (elementwise); the single
#              cross-lane reduce to (1,1) happens only at the very last tile.
# ---------------------------------------------------------------------------
def _fit_kernel(x_ref, w_ref, gamma_ref, beta_ref, t_ref, o_ref,
                stat0_ref, stat1_ref, scale_ref, shift_ref, sse_ref,
                *, eps, inv_m, inv_count, hw_total, tile, needs_mask, use_gram):
    phase = pl.program_id(0)
    n = pl.program_id(1)
    h = pl.program_id(2)
    first_tile = jnp.logical_and(n == 0, h == 0)
    last_tile = jnp.logical_and(n == pl.num_programs(1) - 1,
                                h == pl.num_programs(2) - 1)

    x = x_ref[...].astype(jnp.float32)                       # (Cin, T)
    if needs_mask:
        # Zero the tail columns of the last HW tile so both the batch stats
        # and the squared error ignore the padding.
        col = jax.lax.broadcasted_iota(jnp.int32, (1, tile), 1)
        colmask = col < (hw_total - h * tile)
        x = jnp.where(colmask, x, 0.0)
    xb = x.astype(jnp.bfloat16)                              # MXU-native
    wb = w_ref[...]                                          # (Cout, Cin) bf16

    # ----- phase 0 init -----------------------------------------------------
    @pl.when(jnp.logical_and(phase == 0, first_tile))
    def _():
        stat0_ref[...] = jnp.zeros_like(stat0_ref)
        stat1_ref[...] = jnp.zeros_like(stat1_ref)

    # ----- phase 0: accumulate batch statistics (no per-step XLU) -----------
    if use_gram:
        @pl.when(phase == 0)
        def _():
            # Gram of the student tile: (Cin, T) x (Cin, T)^T -> (Cin, Cin)
            stat0_ref[...] += jax.lax.dot_general(
                xb, xb, (((1,), (1,)), ((), ())),
                preferred_element_type=jnp.float32)
            # Running elementwise sum of x (reduced once at finalize).
            stat1_ref[...] += x
    else:
        @pl.when(phase == 0)
        def _():
            y0 = jnp.dot(wb, xb, preferred_element_type=jnp.float32)
            stat0_ref[...] += y0            # (Cout, T) elementwise
            stat1_ref[...] += y0 * y0

    # ----- phase-1 first step: finalize BN scale/shift, zero SSE ------------
    @pl.when(jnp.logical_and(phase == 1, first_tile))
    def _():
        wf = wb.astype(jnp.float32)
        if use_gram:
            # sum(y)   = row-sums of W @ (sum of x tiles)
            # sum(y^2) = diag(W G W^T) = row-sums of (W G) * W
            s_y = jnp.sum(jnp.dot(wf, stat1_ref[...],
                                  preferred_element_type=jnp.float32),
                          axis=1, keepdims=True)             # (Cout, 1)
            wg = jnp.dot(wf, stat0_ref[...],
                         preferred_element_type=jnp.float32)  # (Cout, Cin)
            sq_y = jnp.sum(wg * wf, axis=1, keepdims=True)    # (Cout, 1)
        else:
            s_y = jnp.sum(stat0_ref[...], axis=1, keepdims=True)
            sq_y = jnp.sum(stat1_ref[...], axis=1, keepdims=True)
        mean = s_y * inv_m
        # Biased batch variance (training-mode BN). Clamp >= 0 against f32
        # cancellation in E[y^2]-E[y]^2.
        # TODO(synk): switch to a shifted/two-pass variance if BN stats drift
        # for feature maps with large |mean|/std.
        var = jnp.maximum(sq_y * inv_m - mean * mean, 0.0)
        inv_std = jax.lax.rsqrt(var + eps)
        scale = gamma_ref[...] * inv_std
        scale_ref[...] = scale
        shift_ref[...] = beta_ref[...] - mean * scale
        sse_ref[...] = jnp.zeros_like(sse_ref)

    # ----- phase 1: conv + BN + ReLU + elementwise SSE accumulation ---------
    @pl.when(phase == 1)
    def _():
        y = jnp.dot(wb, xb, preferred_element_type=jnp.float32)  # (Cout, T)
        z = y * scale_ref[...] + shift_ref[...]                  # broadcast HW
        r = jnp.maximum(z, 0.0)                                  # ReLU
        d = r - t_ref[...].astype(jnp.float32)
        if needs_mask:
            d = jnp.where(colmask, d, 0.0)
        sse_ref[...] += d * d                                    # plain VPU add

    @pl.when(jnp.logical_and(phase == 1, last_tile))
    def _():
        o_ref[...] = jnp.sum(sse_ref[...], keepdims=True) * inv_count


def _pick_hw_tile(hw, cin, cout, budget_bytes=4 * 1024 * 1024):
    """HW tile: multiple of 256 (MXU-friendly), capped so one (x + t) f32 tile
    stays within ~budget_bytes; the tail is masked in-kernel, so HW need not
    be a multiple of the tile."""
    if hw <= 256:
        return hw                            # one full-HW block (exact dim)
    gran = 256
    cap = max(gran, budget_bytes // (4 * (cin + cout)))
    t = min(hw, cap)
    t = (t // gran) * gran
    return max(t, 128)


def fit_loss(f_s_nchw, f_t_nchw, w_conv, gamma, beta_bn, eps=1e-5):
    N, Cin, H, Wsp = f_s_nchw.shape
    _, Cout, _, _ = f_t_nchw.shape
    HW = H * Wsp

    # Free reshapes only -- no NCHW->NHWC transpose, no extra HBM round trip.
    x = f_s_nchw.reshape(N, Cin, HW)
    t = f_t_nchw.reshape(N, Cout, HW)
    # PyTorch conv weight (Cout, Cin, 1, 1) -> (Cout, Cin); bf16 for the MXU.
    w = jnp.asarray(w_conv, jnp.bfloat16).reshape(Cout, Cin)
    g = jnp.asarray(gamma, jnp.float32).reshape(Cout, 1)
    b = jnp.asarray(beta_bn, jnp.float32).reshape(Cout, 1)

    T = _pick_hw_tile(HW, Cin, Cout)
    n_hw = pl.cdiv(HW, T)
    needs_mask = (HW % T) != 0
    use_gram = Cin <= Cout            # non-BiFPN path: Cout = width*Cin >= Cin
    grid = (2, N, n_hw)
    m_total = N * HW                  # true element count (mask excludes pad)

    kern = functools.partial(_fit_kernel, eps=float(eps),
                             inv_m=1.0 / m_total,
                             inv_count=1.0 / (m_total * Cout),
                             hw_total=HW, tile=T,
                             needs_mask=needs_mask, use_gram=use_gram)

    if use_gram:
        stats_flops = 2 * m_total * Cin * Cin + 2 * m_total * Cin
        stat_scratch = [pltpu.VMEM((Cin, Cin), jnp.float32),   # Gram
                        pltpu.VMEM((Cin, T), jnp.float32)]     # sum of x tiles
    else:
        stats_flops = 2 * m_total * Cin * Cout + 4 * m_total * Cout
        stat_scratch = [pltpu.VMEM((Cout, T), jnp.float32),    # sum y
                        pltpu.VMEM((Cout, T), jnp.float32)]    # sum y^2

    cost = pl.CostEstimate(
        flops=int(stats_flops + 2 * m_total * Cin * Cout + 8 * m_total * Cout),
        transcendentals=int(Cout),
        bytes_accessed=int(4 * (2 * m_total * Cin + m_total * Cout)
                           + 2 * Cout * Cin + 8 * Cout + 4))

    # TODO(synk): v7x only -- emit per-core partial stats/SSE as outputs and
    # mark the N axis parallel to use both TensorCores; kept single-core here.
    # TODO(synk): sweep pipeline_mode=pl.Buffered(3) on the x/t streams if the
    # bundle dump shows exposed DMA waits in phase 1.
    out = pl.pallas_call(
        kern,
        out_shape=jax.ShapeDtypeStruct((1, 1), jnp.float32),
        grid=grid,
        in_specs=[
            # student features, batch dim squeezed -> kernel sees (Cin, T)
            pl.BlockSpec((pl.Squeezed(), Cin, T), lambda p, n, h: (n, 0, h)),
            pl.BlockSpec((Cout, Cin), lambda p, n, h: (0, 0)),     # conv W
            pl.BlockSpec((Cout, 1), lambda p, n, h: (0, 0)),       # BN gamma
            pl.BlockSpec((Cout, 1), lambda p, n, h: (0, 0)),       # BN beta
            # teacher only needed in phase 1; p*index pins it to block 0
            # during phase 0 so it is DMA'd once and not refetched per step.
            pl.BlockSpec((pl.Squeezed(), Cout, T),
                         lambda p, n, h: (p * n, 0, p * h)),
        ],
        out_specs=pl.BlockSpec((1, 1), lambda p, n, h: (0, 0)),
        scratch_shapes=stat_scratch + [
            pltpu.VMEM((Cout, 1), jnp.float32),   # BN scale
            pltpu.VMEM((Cout, 1), jnp.float32),   # BN shift
            pltpu.VMEM((Cout, T), jnp.float32),   # elementwise SSE accumulator
        ],
        compiler_params=pltpu.CompilerParams(
            dimension_semantics=("arbitrary", "arbitrary", "arbitrary"),
            vmem_limit_bytes=48 * 1024 * 1024),
        cost_estimate=cost,
    )(x, w, g, b, t)
    return out[0, 0]


# ---------------------------------------------------------------------------
# HintLoss forward
# ---------------------------------------------------------------------------
def hint_loss(o_s, o_t, g_s, g_t, params, alpha, beta, temperature):
    # TODO(synk): fuse the per-layer fit_loss pallas_calls (heterogeneous
    # Cin/Cout/HW per layer) into one call via scalar-prefetched per-layer
    # offsets to amortize dispatch overhead; kept separate for clarity.
    loss = alpha * kd_loss(o_s, o_t, temperature)
    fit = jnp.float32(0.0)
    for (f_s, f_t), (w_conv, gamma, beta_bn) in zip(zip(g_s, g_t), params):
        fit = fit + fit_loss(f_s, f_t, w_conv, gamma, beta_bn)
    return loss + beta * fit


if __name__ == "__main__":
    key = jax.random.PRNGKey(0)

    # args: network_channels=[4, 8], width=2 (non-BiFPN path -> Cout = width*Cin),
    #       alpha=0.5, beta=0.5, T=4
    batch, num_classes = 2, 10
    H = Wsp = 16
    network_channels = [4, 8]
    width = 2
    alpha, beta_coef, temperature = 0.5, 0.5, 4.0

    o_s = jax.random.normal(jax.random.fold_in(key, 0), (batch, num_classes), jnp.float32)
    o_t = jax.random.normal(jax.random.fold_in(key, 1), (batch, num_classes), jnp.float32)

    g_s, g_t, params = [], [], []
    for i, cin in enumerate(network_channels):
        cout = width * cin
        f_s = jax.random.normal(jax.random.fold_in(key, 100 + i),
                                (batch, cin, H, Wsp), jnp.float32)
        f_t = jax.random.normal(jax.random.fold_in(key, 200 + i),
                                (batch, cout, H, Wsp), jnp.float32)
        # conv1x1 weight init: normal(0, sqrt(2/n)), n = k*k*out_channels
        n = 1 * 1 * cout
        w_conv = (jax.random.normal(jax.random.fold_in(key, 300 + i),
                                    (cout, cin, 1, 1), jnp.float32)
                  * math.sqrt(2.0 / n))                         # (Cout, Cin, 1, 1)
        gamma = jnp.ones((cout,), jnp.float32)                  # BN weight = 1
        beta_bn = jnp.zeros((cout,), jnp.float32)               # BN bias = 0
        g_s.append(f_s)
        g_t.append(f_t)
        params.append((w_conv, gamma, beta_bn))

    loss = hint_loss(o_s, o_t, g_s, g_t, params, alpha, beta_coef, temperature)
    jax.block_until_ready(loss)
    print("KERNEL_OK")
</pallas_src>

<mosaic_0001>
module attributes {stable_mosaic.version = 11 : i64} {
  func.func @_kd_kernel(%arg0: i32, %arg1: memref<2x10xf32, #tpu.memory_space<vmem>>, %arg2: memref<2x10xf32, #tpu.memory_space<vmem>>, %arg3: memref<1x1xf32, #tpu.memory_space<vmem>>, %arg4: memref<2x10xf32, #tpu.memory_space<vmem>>) attributes {dimension_semantics = [#tpu.dimension_semantics<arbitrary>], iteration_bounds = array<i64: 1>, scalar_prefetch = 0 : i64, scratch_operands = 1 : i64, tpu.core_type = #tpu.core_type<tc>, window_params = [{transform_indices = @transform_0, window_bounds = array<i64: 2, 10>}, {transform_indices = @transform_1, window_bounds = array<i64: 2, 10>}, {pipeline_mode = #tpu.pipeline_mode<synchronous>, transform_indices = @transform_2, window_bounds = array<i64: 1, 1>}]} {
    %c0_i32 = arith.constant 0 : i32
    %0 = arith.cmpi eq, %arg0, %c0_i32 : i32
    %1 = arith.extui %0 : i1 to i32
    %c0_i32_0 = arith.constant 0 : i32
    %2 = arith.cmpi ne, %1, %c0_i32_0 : i32
    scf.if %2 {
      %cst_15 = arith.constant 0.000000e+00 : f32
      %40 = vector.broadcast %cst_15 : f32 to vector<2x10xf32>
      %c0_16 = arith.constant 0 : index
      %c0_17 = arith.constant 0 : index
      %41 = vector.load %arg4[%c0_16, %c0_17] : memref<2x10xf32, #tpu.memory_space<vmem>>, vector<2x10xf32>
      tpu.vector_store %arg4[%c0_16, %c0_17], %40 {strides = array<i32>} : memref<2x10xf32, #tpu.memory_space<vmem>>, vector<2x10xf32>,
    } else {
    }
    %c0 = arith.constant 0 : index
    %c0_1 = arith.constant 0 : index
    %3 = vector.load %arg1[%c0, %c0_1] : memref<2x10xf32, #tpu.memory_space<vmem>>, vector<2x10xf32>
    %c0_2 = arith.constant 0 : index
    %c0_3 = arith.constant 0 : index
    %4 = vector.load %arg2[%c0_2, %c0_3] : memref<2x10xf32, #tpu.memory_space<vmem>>, vector<2x10xf32>
    %cst = arith.constant 2.500000e-01 : f32
    %5 = vector.broadcast %cst : f32 to vector<2x10xf32>
    %6 = arith.mulf %3, %5 : vector<2x10xf32>
    %cst_4 = arith.constant 2.500000e-01 : f32
    %7 = vector.broadcast %cst_4 : f32 to vector<2x10xf32>
    %8 = arith.mulf %4, %7 : vector<2x10xf32>
    %cst_5 = arith.constant dense<0xFF800000> : vector<2xf32>
    %9 = vector.multi_reduction <maximumf>, %6, %cst_5 [1] : vector<2x10xf32> to vector<2xf32>
    %10 = vector.shape_cast %9 : vector<2xf32> to vector<2x1xf32>
    %11 = vector.broadcast %10 : vector<2x1xf32> to vector<2x10xf32>
    %12 = arith.subf %6, %11 : vector<2x10xf32>
    %13 = math.exp %12 : vector<2x10xf32>
    %cst_6 = arith.constant dense<0.000000e+00> : vector<2xf32>
    %14 = vector.multi_reduction <add>, %13, %cst_6 [1] : vector<2x10xf32> to vector<2xf32>
    %15 = vector.shape_cast %14 : vector<2xf32> to vector<2x1xf32>
    %16 = math.log %15 : vector<2x1xf32>
    %17 = vector.broadcast %16 : vector<2x1xf32> to vector<2x10xf32>
    %18 = arith.subf %12, %17 : vector<2x10xf32>
    %cst_7 = arith.constant dense<0xFF800000> : vector<2xf32>
    %19 = vector.multi_reduction <maximumf>, %8, %cst_7 [1] : vector<2x10xf32> to vector<2xf32>
    %20 = vector.shape_cast %19 : vector<2xf32> to vector<2x1xf32>
    %21 = vector.broadcast %20 : vector<2x1xf32> to vector<2x10xf32>
    %22 = arith.subf %8, %21 : vector<2x10xf32>
    %23 = math.exp %22 : vector<2x10xf32>
    %cst_8 = arith.constant dense<0.000000e+00> : vector<2xf32>
    %24 = vector.multi_reduction <add>, %23, %cst_8 [1] : vector<2x10xf32> to vector<2xf32>
    %25 = vector.shape_cast %24 : vector<2xf32> to vector<2x1xf32>
    %26 = tpu.reciprocal %25 {approx = true} : vector<2x1xf32> -> vector<2x1xf32>
    %27 = vector.broadcast %26 : vector<2x1xf32> to vector<2x10xf32>
    %28 = arith.mulf %23, %27 : vector<2x10xf32>
    %29 = math.log %25 : vector<2x1xf32>
    %30 = vector.broadcast %29 : vector<2x1xf32> to vector<2x10xf32>
    %31 = arith.subf %22, %30 : vector<2x10xf32>
    %c0_9 = arith.constant 0 : index
    %c0_10 = arith.constant 0 : index
    %32 = vector.load %arg4[%c0_9, %c0_10] : memref<2x10xf32, #tpu.memory_space<vmem>>, vector<2x10xf32>
    %33 = arith.subf %31, %18 : vector<2x10xf32>
    %34 = arith.mulf %28, %33 : vector<2x10xf32>
    %35 = arith.addf %32, %34 : vector<2x10xf32>
    %c0_11 = arith.constant 0 : index
    %c0_12 = arith.constant 0 : index
    %36 = vector.load %arg4[%c0_11, %c0_12] : memref<2x10xf32, #tpu.memory_space<vmem>>, vector<2x10xf32>
    tpu.vector_store %arg4[%c0_11, %c0_12], %35 {strides = array<i32>} : memref<2x10xf32, #tpu.memory_space<vmem>>, vector<2x10xf32>,
    %c0_i32_13 = arith.constant 0 : i32
    %37 = arith.cmpi eq, %arg0, %c0_i32_13 : i32
    %38 = arith.extui %37 : i1 to i32
    %c0_i32_14 = arith.constant 0 : i32
    %39 = arith.cmpi ne, %38, %c0_i32_14 : i32
    scf.if %39 {
      %c0_15 = arith.constant 0 : index
      %c0_16 = arith.constant 0 : index
      %40 = vector.load %arg4[%c0_15, %c0_16] : memref<2x10xf32, #tpu.memory_space<vmem>>, vector<2x10xf32>
      %41 = vector.shape_cast %40 : vector<2x10xf32> to vector<1x2x10xf32>
      %cst_17 = arith.constant dense<0.000000e+00> : vector<1xf32>
      %42 = vector.multi_reduction <add>, %41, %cst_17 [1, 2] : vector<1x2x10xf32> to vector<1xf32>
      %43 = vector.shape_cast %42 : vector<1xf32> to vector<1x1x1xf32>
      %44 = vector.extract %43[0, 0, 0] : f32 from vector<1x1x1xf32>
      %45 = vector.broadcast %44 : f32 to vector<1x1xf32>
      %cst_18 = arith.constant 8.000000e+00 : f32
      %46 = vector.broadcast %cst_18 : f32 to vector<1x1xf32>
      %47 = arith.mulf %45, %46 : vector<1x1xf32>
      %c0_19 = arith.constant 0 : index
      %c0_20 = arith.constant 0 : index
      %48 = vector.load %arg3[%c0_19, %c0_20] : memref<1x1xf32, #tpu.memory_space<vmem>>, vector<1x1xf32>
      tpu.vector_store %arg3[%c0_19, %c0_20], %47 {strides = array<i32>} : memref<1x1xf32, #tpu.memory_space<vmem>>, vector<1x1xf32>,
    } else {
    }
    return
  }
  func.func @transform_0(%arg0: i32) -> (i32, i32) {
    %c0_i32 = arith.constant 0 : i32
    %c0_i32_0 = arith.constant 0 : i32
    return %arg0, %c0_i32 : i32, i32
  }
  func.func @transform_1(%arg0: i32) -> (i32, i32) {
    %c0_i32 = arith.constant 0 : i32
    %c0_i32_0 = arith.constant 0 : i32
    return %arg0, %c0_i32 : i32, i32
  }
  func.func @transform_2(%arg0: i32) -> (i32, i32) {
    %c0_i32 = arith.constant 0 : i32
    %c0_i32_0 = arith.constant 0 : i32
    %c0_i32_1 = arith.constant 0 : i32
    return %c0_i32, %c0_i32_0 : i32, i32
  }
}

</mosaic_0001>

<bundles_post_ra>
// kernel: tpu_custom_call.1
= control target key start
LH: loop header
LB: loop body
LE: loop exit
PB: predicated region body
PF: predicated region fallthrough
CT: control target
= control target key end

     0   :  { %7 = vsyncpa [#allocation4], 0  ;;  %s229_s0 = inlined_call_operand.hbm [shape: f32[2,10], index: 0, kind: input, shape index: {}]   ;;  %s230_s1 = inlined_call_operand.hbm [shape: f32[2,10], index: 1, kind: input, shape index: {}]   ;;  %s231_s2 = inlined_call_operand.hbm [shape: f32[1,1], index: 2, kind: output, shape index: {}]  }
   0x1   :  { %8 = vsyncpa [#allocation7], 0 }
   0x2   :  { %9 = vsyncpa [#allocation5], 0  ;;  %s194_s9 = smov [#allocation3]   ;;  %s195_s11 = smov [#allocation6]  }
   0x3   :  { %s16_s10 = sshll.u32 %s194_s9, 4  ;;  %s26_s12 = sshll.u32 %s195_s11, 4  ;;  %s17_s10 = int_to_ptr.vmem [resolvable:$true] %s16_s10  ;;  %s27_s12 = int_to_ptr.vmem [resolvable:$true] %s26_s12 }
   0x4   :  { %s136_s13 = scalar_lea.vmem %s17_s10, 32  ;;  %p141_p1 = scmp.lt.s32.totalorder %s17_s10, %s17_s10 }
   0x5   :  { %p137_p0 = scmp.ne.s32.totalorder %s17_s10, %s136_s13  ;;  %p142_p2 = scmp.lt.s32.totalorder %s136_s13, %s136_s13 }
   0x7   :  { %p143_p3 = por %p142_p2, %p141_p1 }
   0x9   :  { %p144_p4 = pnand %p143_p3, %p137_p0 }
   0xb   :  { %147 = shalt.err (!%p144_p4)
}
   0xc   :  { %19 = dma.hbm_to_vmem [thread:$0]  %s229_s0, 32, %s17_s10, [#allocation4]  }
   0xd   :  { %s156_s16 = scalar_lea.vmem %s27_s12, 32  ;;  %p161_p6 = scmp.lt.s32.totalorder %s27_s12, %s27_s12 }
   0xe   :  { %p157_p5 = scmp.ne.s32.totalorder %s27_s12, %s156_s16  ;;  %p162_p7 = scmp.lt.s32.totalorder %s156_s16, %s156_s16 }
  0x10   :  { %p163_p8 = por %p162_p7, %p161_p6 }
  0x12   :  { %p164_p9 = pnand %p163_p8, %p157_p5 }
  0x14   :  { %167 = shalt.err (!%p164_p9)
}
  0x15   :  { %29 = dma.hbm_to_vmem [thread:$0]  %s230_s1, 32, %s27_s12, [#allocation7]  }
  0x16   :  { %188 = dma.done.wait [#allocation4], 32  }
  0x17   :  { %189 = vsyncadd [#allocation4], 4294967264 }
  0x18   :  { %190 = dma.done.wait [#allocation7], 32  }
  0x19   :  { %191 = vsyncadd [#allocation7], 4294967264  ;;  %vm40_vm0 = vcmask 74752   ;;  %v196_v0 = vmov 0.0   ;;  %v42_v1 = vld [vmem:[#allocation3] sm:$0x3] }
  0x1a   :  { %41 = vst.msk [vmem:[#allocation2] sm:$0x3] %vm40_vm0, %v196_v0  ;;  %v43_v2 = vld [vmem:[#allocation6] sm:$0x3]  ;;  %v44_v3 = vmul.f32 0.25, %v42_v1  ;;  %s197_s0 = smov [#allocation8]  }
  0x1b   :  { %v45_v4 = vmul.f32 0.25, %v43_v2  ;;  %s102_s1 = sshll.u32 %s197_s0, 4  ;;  %vm94_vm1 = vcmask 0   ;;  %s103_s1 = int_to_ptr.vmem [resolvable:$true] %s102_s1 }
  0x1c   :  { %v47_v5 = vsel %vm40_vm0, %v44_v3, -inf  ;;  %s168_s20 = scalar_lea.vmem %s103_s1, 16  ;;  %s172_s21 = scalar_lea.vmem %s103_s1, 32 }
  0x1d   :  { %48 = vmax.xlane.f32.xlu0 %v47_v5  ;;  %v59_v6 = vsel %vm40_vm0, %v45_v4, -inf  ;;  %p169_p10 = scmp.ne.s32.totalorder %s103_s1, %s168_s20  ;;  %p173_p11 = scmp.lt.s32.totalorder %s103_s1, %s103_s1 }
  0x1e   :  { %p174_p12 = scmp.lt.s32.totalorder %s172_s21, %s168_s20 }
  0x20   :  { %p175_p13 = por %p174_p12, %p173_p11 }
  0x21   :  { %60 = vmax.xlane.f32.xlu0 %v59_v6  ;;  %v73_v28 = vld [vmem:[#allocation2] sm:$0x3] }
  0x22   :  { %p176_p0 = pnand %p175_p13, %p169_p10 }
  0xa6   :  { %v49_v7 = vpop.xlane.xlu0 %48 }
  0xa7   :  { %v50_v8 = vsub.f32 %v44_v3, %v49_v7 }
  0xa9   :  { %v51_v9 = vmul.f32 1.442695, %v50_v8 }
  0xaa   :  { %v61_v10 = vpop.xlane.xlu0 %60 }
  0xab   :  { %118 = vpow2.f32 %v51_v9  ;;  %v62_v11 = vsub.f32 %v45_v4, %v61_v10 }
  0xad   :  { %v63_v12 = vmul.f32 1.442695, %v62_v11 }
  0xaf   :  { %120 = vpow2.f32 %v63_v12 }
  0xb8   :  { %v119_v13 = vpop.eup %118 }
  0xb9   :  { %v53_v14 = vsel %vm40_vm0, %v119_v13, 0.0 }
  0xba   :  { %54 = vadd.xlane.f32.xlu1 %v53_v14 }
  0xbc   :  { %v121_v15 = vpop.eup %120 }
  0xbd   :  { %v65_v16 = vsel %vm40_vm0, %v121_v15, 0.0 }
  0xbe   :  { %66 = vadd.xlane.f32.xlu1 %v65_v16 }
 0x143   :  { %v55_v17 = vpop.xlane.xlu1 %54 }
 0x144   :  { %122 = vlog2.f32 %v55_v17 }
 0x147   :  { %v67_v18 = vpop.xlane.xlu1 %66 }
 0x148   :  { %124 = vlog2.f32 %v67_v18 }
 0x149   :  { %126 = vrcp.f32 %v67_v18 }
 0x151   :  { %v123_v19 = vpop.eup %122 }
 0x152   :  { %v57_v20 = vmul.f32 0.6931472, %v123_v19 }
 0x154   :  { %v58_v24 = vsub.f32 %v50_v8, %v57_v20 }
 0x155   :  { %v125_v21 = vpop.eup %124 }
 0x156   :  { %v71_v22 = vmul.f32 0.6931472, %v125_v21  ;;  %v127_v23 = vpop.eup %126 }
 0x157   :  { %v69_v26 = vmul.f32 %v127_v23, %v121_v15 }
 0x158   :  { %v72_v25 = vsub.f32 %v62_v11, %v71_v22 }
 0x15a   :  { %v74_v27 = vsub.f32 %v72_v25, %v58_v24 }
 0x15c   :  { %v75_v29 = vmul.f32 %v74_v27, %v69_v26 }
 0x15e   :  { %v76_v30 = vadd.f32 %v75_v29, %v73_v28 }
 0x160   :  { %77 = vst.msk [vmem:[#allocation2] sm:$0x3] %vm40_vm0, %v76_v30 }
 0x167   :  { %v81_v31 = vld [vmem:[#allocation2] sm:$0x3] }
 0x168   :  { %v82_v32 = vsel %vm40_vm0, %v81_v31, 0.0 }
 0x169   :  { %83 = vadd.xlane.f32.xlu0 %v82_v32 }
 0x1f2   :  { %v84_v33 = vpop.xlane.xlu0 %83 }
 0x1f3   :  { %v85_v34 = vrot.slane %v84_v33, 4 }
 0x1f5   :  { %v86_v35 = vadd.f32 %v85_v34, %v84_v33 }
 0x1f7   :  { %v87_v36 = vrot.slane %v86_v35, 2 }
 0x1f9   :  { %v88_v37 = vadd.f32 %v87_v36, %v86_v35 }
 0x1fb   :  { %v89_v38 = vrot.slane %v88_v37, 1 }
 0x1fd   :  { %v90_v39 = vadd.f32 %v89_v38, %v88_v37 }
 0x1ff   :  { %112 = vpush %v90_v39 }
 0x230   :  { %s113_s19 = spop %112 }
 0x231   :  { %v92_v40 = vstv %s113_s19 }
 0x232   :  { %v93_v41 = vmul.f32 8.0, %v92_v40 }
 0x234   :  { %95 = vst.msk [vmem:[#allocation8] sm:$0x1] %vm94_vm1, %v93_v41 }
 0x235   :  { %179 = shalt.err (!%p176_p0)
}
 0x236   :  { %105 = dma.vmem_to_hbm [thread:$0]  %s103_s1, 16, %s231_s2, [#allocation5]  }
 0x237   :  { %192 = dma.done.wait [#allocation5], 16  }
 0x238   :  { %193 = vsyncadd [#allocation5], 4294967280 }
 0x239   :  { %109 = vsyncpa [#allocation4], 1 }
 0x23a   :  { %110 = vsyncpa [#allocation7], 1 }
 0x23b   :  { %111 = vsyncpa [#allocation5], 1 }

</bundles_post_ra>
